<compile_context>
chip_gen: v7x
topology: tpu7x:2x2x1
jax: 0.10.0
libtpu: 0.0.40
codegen_flags: <defaults>
</compile_context>

<pallas_src>
import jax
import jax.numpy as jnp
from jax.experimental import pallas as pl
from jax.experimental.pallas import tpu as pltpu


def _mse_sum_kernel(pred_ref, targ_ref, out_ref, acc_ref):
    # Grid = (splits, reduction_steps).  acc_ref is an (8, lanes) f32 vector
    # partial-sum scratch, resident across the reduction axis (axis 1).
    @pl.when(pl.program_id(1) == 0)
    def _init():
        acc_ref[...] = jnp.zeros_like(acc_ref)

    # Hot loop: cast (no-op for f32), subtract, square, fold the leading group
    # axis with vector adds only — no cross-lane work, no masked scalar store.
    d = pred_ref[...].astype(jnp.float32) - targ_ref[...].astype(jnp.float32)
    acc_ref[...] = acc_ref[...] + jnp.sum(d * d, axis=0)

    # Epilogue (once per split): single full reduction + scalar-block store.
    @pl.when(pl.program_id(1) == pl.num_programs(1) - 1)
    def _finalize():
        out_ref[...] = jnp.full((1, 1, 1), jnp.sum(acc_ref[...]),
                                dtype=out_ref.dtype)


def mini_mse_loss(pred, targ, *, lanes=512, max_groups_per_tile=128,
                  num_splits=2):
    """sum((pred - targ)**2) over all elements, computed in Pallas on TPU.

    lanes:               lane width of the packed layout (multiple of 128).
    max_groups_per_tile: cap on (8 x lanes)-element groups per grid step
                         (128 * 8 * 512 * 4B = 2 MiB f32 tiles by default;
                         2 inputs x 2 buffers = 8 MiB, well inside the 32 MiB
                         scoped-VMEM default on v5e/v6e/v7x).
    num_splits:          leading "parallel" grid axis — engages both
                         TensorCores on v7x, no-op elsewhere.
    """
    assert pred.shape == targ.shape, "pred/targ shapes must match"
    assert lanes % 128 == 0

    p = pred.reshape(-1)
    t = targ.reshape(-1)
    n = p.size

    sublanes = 8
    elems_per_group = sublanes * lanes                      # one (8, lanes) slab
    n_groups = pl.cdiv(n, elems_per_group)

    nsplit = max(1, min(num_splits, n_groups))              # don't over-split tiny inputs
    groups_per_split = pl.cdiv(n_groups, nsplit)
    steps = pl.cdiv(groups_per_split, max_groups_per_tile)  # reduction steps per split
    groups_per_tile = pl.cdiv(groups_per_split, steps)      # balanced tile size

    padded_groups = nsplit * steps * groups_per_tile
    padded_n = padded_groups * elems_per_group
    pad = padded_n - n
    if pad:
        # Zero padding in BOTH streams -> diff == 0 -> contributes nothing.
        p = jnp.pad(p, (0, pad))
        t = jnp.pad(t, (0, pad))

    p3 = p.reshape(padded_groups, sublanes, lanes)
    t3 = t.reshape(padded_groups, sublanes, lanes)

    def in_index_map(c, i):
        return (c * steps + i, 0, 0)

    def out_index_map(c, i):
        return (c, 0, 0)

    partials = pl.pallas_call(
        _mse_sum_kernel,
        out_shape=jax.ShapeDtypeStruct((nsplit, 1, 1), jnp.float32),
        grid_spec=pltpu.PrefetchScalarGridSpec(
            num_scalar_prefetch=0,
            grid=(nsplit, steps),
            in_specs=[
                pl.BlockSpec((groups_per_tile, sublanes, lanes), in_index_map),
                pl.BlockSpec((groups_per_tile, sublanes, lanes), in_index_map),
            ],
            out_specs=pl.BlockSpec((1, 1, 1), out_index_map),
            scratch_shapes=[pltpu.VMEM((sublanes, lanes), jnp.float32)],
        ),
        compiler_params=pltpu.CompilerParams(
            # split axis shardable across cores; reduction axis last, sequential
            dimension_semantics=("parallel", "arbitrary"),
        ),
    )(p3, t3)

    # Combine the per-core partial sums (trivial host-of-kernel work).
    return jnp.sum(partials)


class MiniLoss:
    """Pallas port of the PyTorch `miniloss` module."""

    def __init__(self, class_types):
        self.clazlen = len(class_types)  # recorded, unused by the forward math

    def __call__(self, pred, targ, callback=None):
        loss = mini_mse_loss(pred, targ)
        if callback is not None:
            callback(loss)
        # TODO(synk): the torch module rebinds the global `print` and prints the
        # loss by default; that host-side side effect has no Pallas equivalent
        # and is only reproduced via the optional callback above.
        return loss


if __name__ == "__main__":
    # Deterministic synthetic inputs (no checkpoint loading).
    class_types = list(range(8))          # miniloss(class_types) -> clazlen = 8
    num_classes = len(class_types)
    batch = 16

    key = jax.random.PRNGKey(0)
    kp, kt = jax.random.split(key)
    pred = jax.random.normal(kp, (batch, num_classes), dtype=jnp.float32)
    targ = jax.random.normal(kt, (batch, num_classes), dtype=jnp.float32)

    logged = []
    loss_mod = MiniLoss(class_types)
    loss = loss_mod(pred, targ, callback=logged.append)
    jax.block_until_ready(loss)

    ref = jnp.sum((pred - targ) ** 2)
    assert jnp.allclose(loss, ref, rtol=1e-5, atol=1e-5), (loss, ref)

    # Second small check that exercises the ragged-tail padding, the multi-step
    # reduction axis, and the dual-core split path (tiny test tiles on purpose).
    pred2 = jax.random.normal(jax.random.PRNGKey(1), (64, 257), dtype=jnp.float32)
    targ2 = jax.random.normal(jax.random.PRNGKey(2), (64, 257), dtype=jnp.float32)
    loss2 = mini_mse_loss(pred2, targ2, lanes=128, max_groups_per_tile=2)
    jax.block_until_ready(loss2)
    ref2 = jnp.sum((pred2 - targ2) ** 2)
    assert jnp.allclose(loss2, ref2, rtol=1e-5, atol=1e-4), (loss2, ref2)

    print("KERNEL_OK")
</pallas_src>

<mosaic_0001>
module attributes {stable_mosaic.version = 11 : i64} {
  func.func @_mse_sum_kernel(%arg0: i32, %arg1: i32, %arg2: memref<1x8x512xf32, #tpu.memory_space<vmem>>, %arg3: memref<1x8x512xf32, #tpu.memory_space<vmem>>, %arg4: memref<1x1x1xf32, #tpu.memory_space<vmem>>, %arg5: memref<8x512xf32, #tpu.memory_space<vmem>>) attributes {dimension_semantics = [#tpu.dimension_semantics<parallel>, #tpu.dimension_semantics<arbitrary>], iteration_bounds = array<i64: 1, 1>, scalar_prefetch = 0 : i64, scratch_operands = 1 : i64, tpu.core_type = #tpu.core_type<tc>, window_params = [{transform_indices = @transform_0, window_bounds = array<i64: 1, 8, 512>}, {transform_indices = @transform_1, window_bounds = array<i64: 1, 8, 512>}, {transform_indices = @transform_2, window_bounds = array<i64: 1, 1, 1>}]} {
    %c0_i32 = arith.constant 0 : i32
    %0 = arith.cmpi eq, %arg1, %c0_i32 : i32
    %1 = arith.extui %0 : i1 to i32
    %c0_i32_0 = arith.constant 0 : i32
    %2 = arith.cmpi ne, %1, %c0_i32_0 : i32
    scf.if %2 {
      %cst_12 = arith.constant 0.000000e+00 : f32
      %14 = vector.broadcast %cst_12 : f32 to vector<8x512xf32>
      %c0_13 = arith.constant 0 : index
      %c0_14 = arith.constant 0 : index
      %15 = vector.load %arg5[%c0_13, %c0_14] : memref<8x512xf32, #tpu.memory_space<vmem>>, vector<8x512xf32>
      tpu.vector_store %arg5[%c0_13, %c0_14], %14 {strides = array<i32>} : memref<8x512xf32, #tpu.memory_space<vmem>>, vector<8x512xf32>,
    } else {
    }
    %c0 = arith.constant 0 : index
    %c0_1 = arith.constant 0 : index
    %c0_2 = arith.constant 0 : index
    %3 = vector.load %arg2[%c0, %c0_1, %c0_2] : memref<1x8x512xf32, #tpu.memory_space<vmem>>, vector<1x8x512xf32>
    %c0_3 = arith.constant 0 : index
    %c0_4 = arith.constant 0 : index
    %c0_5 = arith.constant 0 : index
    %4 = vector.load %arg3[%c0_3, %c0_4, %c0_5] : memref<1x8x512xf32, #tpu.memory_space<vmem>>, vector<1x8x512xf32>
    %5 = arith.subf %3, %4 : vector<1x8x512xf32>
    %c0_6 = arith.constant 0 : index
    %c0_7 = arith.constant 0 : index
    %6 = vector.load %arg5[%c0_6, %c0_7] : memref<8x512xf32, #tpu.memory_space<vmem>>, vector<8x512xf32>
    %7 = arith.mulf %5, %5 : vector<1x8x512xf32>
    %cst = arith.constant dense<0.000000e+00> : vector<8x512xf32>
    %8 = vector.multi_reduction <add>, %7, %cst [0] : vector<1x8x512xf32> to vector<8x512xf32>
    %9 = arith.addf %6, %8 : vector<8x512xf32>
    %c0_8 = arith.constant 0 : index
    %c0_9 = arith.constant 0 : index
    %10 = vector.load %arg5[%c0_8, %c0_9] : memref<8x512xf32, #tpu.memory_space<vmem>>, vector<8x512xf32>
    tpu.vector_store %arg5[%c0_8, %c0_9], %9 {strides = array<i32>} : memref<8x512xf32, #tpu.memory_space<vmem>>, vector<8x512xf32>,
    %c0_i32_10 = arith.constant 0 : i32
    %11 = arith.cmpi eq, %arg1, %c0_i32_10 : i32
    %12 = arith.extui %11 : i1 to i32
    %c0_i32_11 = arith.constant 0 : i32
    %13 = arith.cmpi ne, %12, %c0_i32_11 : i32
    scf.if %13 {
      %c0_12 = arith.constant 0 : index
      %c0_13 = arith.constant 0 : index
      %14 = vector.load %arg5[%c0_12, %c0_13] : memref<8x512xf32, #tpu.memory_space<vmem>>, vector<8x512xf32>
      %15 = vector.shape_cast %14 : vector<8x512xf32> to vector<1x8x512xf32>
      %cst_14 = arith.constant dense<0.000000e+00> : vector<1xf32>
      %16 = vector.multi_reduction <add>, %15, %cst_14 [1, 2] : vector<1x8x512xf32> to vector<1xf32>
      %17 = vector.shape_cast %16 : vector<1xf32> to vector<1x1x1xf32>
      %18 = vector.extract %17[0, 0, 0] : f32 from vector<1x1x1xf32>
      %19 = vector.broadcast %18 : f32 to vector<1x1x1xf32>
      %c0_15 = arith.constant 0 : index
      %c0_16 = arith.constant 0 : index
      %c0_17 = arith.constant 0 : index
      %20 = vector.load %arg4[%c0_15, %c0_16, %c0_17] : memref<1x1x1xf32, #tpu.memory_space<vmem>>, vector<1x1x1xf32>
      tpu.vector_store %arg4[%c0_15, %c0_16, %c0_17], %19 {strides = array<i32>} : memref<1x1x1xf32, #tpu.memory_space<vmem>>, vector<1x1x1xf32>,
    } else {
    }
    return
  }
  func.func @transform_0(%arg0: i32, %arg1: i32) -> (i32, i32, i32) {
    %c1_i32 = arith.constant 1 : i32
    %0 = arith.muli %arg0, %c1_i32 : i32
    %1 = arith.addi %0, %arg1 : i32
    %c0_i32 = arith.constant 0 : i32
    %c0_i32_0 = arith.constant 0 : i32
    %c0_i32_1 = arith.constant 0 : i32
    return %1, %c0_i32, %c0_i32_0 : i32, i32, i32
  }
  func.func @transform_1(%arg0: i32, %arg1: i32) -> (i32, i32, i32) {
    %c1_i32 = arith.constant 1 : i32
    %0 = arith.muli %arg0, %c1_i32 : i32
    %1 = arith.addi %0, %arg1 : i32
    %c0_i32 = arith.constant 0 : i32
    %c0_i32_0 = arith.constant 0 : i32
    %c0_i32_1 = arith.constant 0 : i32
    return %1, %c0_i32, %c0_i32_0 : i32, i32, i32
  }
  func.func @transform_2(%arg0: i32, %arg1: i32) -> (i32, i32, i32) {
    %c0_i32 = arith.constant 0 : i32
    %c0_i32_0 = arith.constant 0 : i32
    %c0_i32_1 = arith.constant 0 : i32
    return %arg0, %c0_i32, %c0_i32_0 : i32, i32, i32
  }
}

</mosaic_0001>

<bundles_post_ra>
// kernel: tpu_custom_call.1
= control target key start
LH: loop header
LB: loop body
LE: loop exit
PB: predicated region body
PF: predicated region fallthrough
CT: control target
= control target key end

     0   :  { %7 = vsyncpa [#allocation4], 0  ;;  %s255_s0 = inlined_call_operand.hbm [shape: f32[1,8,512], index: 0, kind: input, shape index: {}]   ;;  %s256_s1 = inlined_call_operand.hbm [shape: f32[1,8,512], index: 1, kind: input, shape index: {}]   ;;  %s257_s2 = inlined_call_operand.hbm [shape: f32[1,1,1], index: 2, kind: output, shape index: {}]  }
   0x1   :  { %8 = vsyncpa [#allocation7], 0 }
   0x2   :  { %9 = vsyncpa [#allocation5], 0  ;;  %s201_s9 = smov [#allocation3]   ;;  %s202_s11 = smov [#allocation6]  }
   0x3   :  { %s20_s10 = sshll.u32 %s201_s9, 4  ;;  %s34_s12 = sshll.u32 %s202_s11, 4  ;;  %s21_s10 = int_to_ptr.vmem [resolvable:$true] %s20_s10  ;;  %s35_s12 = int_to_ptr.vmem [resolvable:$true] %s34_s12 }
   0x4   :  { %s129_s15 = scalar_lea.hbm %s255_s0, 512 }
   0x5   :  { %p130_p0 = scmp.ne.s32.totalorder %s255_s0, %s129_s15  ;;  %p133_p1 = scmp.lt.u32.totalorder %s129_s15, %s255_s0 }
   0x7   :  { %p135_p2 = pnand %p133_p1, %p130_p0 }
   0x9   :  { %138 = shalt.err (!%p135_p2)
}
   0xa   :  { %s139_s20 = scalar_lea.vmem %s21_s10, 512  ;;  %p144_p4 = scmp.lt.s32.totalorder %s21_s10, %s21_s10 }
   0xb   :  { %p140_p3 = scmp.ne.s32.totalorder %s21_s10, %s139_s20  ;;  %p145_p5 = scmp.lt.s32.totalorder %s139_s20, %s139_s20 }
   0xd   :  { %p146_p6 = por %p145_p5, %p144_p4 }
   0xf   :  { %p147_p7 = pnand %p146_p6, %p140_p3 }
  0x11   :  { %150 = shalt.err (!%p147_p7)
}
  0x12   :  { %23 = dma.hbm_to_vmem [thread:$0]  %s255_s0, 512, %s21_s10, [#allocation4]  }
  0x13   :  { %s151_s25 = scalar_lea.hbm %s256_s1, 512 }
  0x14   :  { %p152_p8 = scmp.ne.s32.totalorder %s256_s1, %s151_s25  ;;  %p155_p9 = scmp.lt.u32.totalorder %s151_s25, %s256_s1 }
  0x16   :  { %p157_p10 = pnand %p155_p9, %p152_p8 }
  0x18   :  { %160 = shalt.err (!%p157_p10)
}
  0x19   :  { %s161_s30 = scalar_lea.vmem %s35_s12, 512  ;;  %p166_p12 = scmp.lt.s32.totalorder %s35_s12, %s35_s12 }
  0x1a   :  { %p162_p11 = scmp.ne.s32.totalorder %s35_s12, %s161_s30  ;;  %p167_p13 = scmp.lt.s32.totalorder %s161_s30, %s161_s30 }
  0x1c   :  { %p168_p0 = por %p167_p13, %p166_p12 }
  0x1e   :  { %p169_p1 = pnand %p168_p0, %p162_p11 }
  0x20   :  { %172 = shalt.err (!%p169_p1)
}
  0x21   :  { %37 = dma.hbm_to_vmem [thread:$0]  %s256_s1, 512, %s35_s12, [#allocation7]  }
  0x22   :  { %195 = dma.done.wait [#allocation4], 512  }
  0x23   :  { %196 = vsyncadd [#allocation4], 4294966784 }
  0x24   :  { %197 = dma.done.wait [#allocation7], 512  }
  0x25   :  { %198 = vsyncadd [#allocation7], 4294966784  ;;  %v54_v0 = vld [vmem:[#allocation3] sm:$0xff]  ;;  %v55_v1 = vld [vmem:[#allocation3 + $0x8] sm:$0xff]  ;;  %s203_s1 = smov [#allocation8]   ;;  %vm106_vm0 = vcmask 0  }
  0x26   :  { %v56_v2 = vld [vmem:[#allocation3 + $0x10] sm:$0xff]  ;;  %v57_v3 = vld [vmem:[#allocation3 + $0x18] sm:$0xff]  ;;  %v58_v4 = vld [vmem:[#allocation6] sm:$0xff]  ;;  %s114_s4 = sshll.u32 %s203_s1, 4  ;;  %s115_s4 = int_to_ptr.vmem [resolvable:$true] %s114_s4 }
  0x27   :  { %v59_v5 = vld [vmem:[#allocation6 + $0x8] sm:$0xff]  ;;  %v60_v6 = vld [vmem:[#allocation6 + $0x10] sm:$0xff]  ;;  %v61_v7 = vld [vmem:[#allocation6 + $0x18] sm:$0xff]  ;;  %v62_v8 = vsub.f32 %v54_v0, %v58_v4  ;;  %s173_s6 = scalar_lea.vmem %s115_s4, 16  ;;  %s177_s7 = scalar_lea.vmem %s115_s4, 32 }
  0x28   :  { %v63_v9 = vsub.f32 %v55_v1, %v59_v5  ;;  %v64_v10 = vsub.f32 %v56_v2, %v60_v6  ;;  %v65_v11 = vsub.f32 %v57_v3, %v61_v7  ;;  %p174_p2 = scmp.ne.s32.totalorder %s115_s4, %s173_s6  ;;  %p178_p3 = scmp.lt.s32.totalorder %s115_s4, %s115_s4 }
  0x29   :  { %v70_v12 = vmul.f32 %v62_v8, %v62_v8  ;;  %p179_p4 = scmp.lt.s32.totalorder %s177_s7, %s173_s6 }
  0x2a   :  { %v71_v13 = vmul.f32 %v63_v9, %v63_v9  ;;  %v72_v14 = vmul.f32 %v64_v10, %v64_v10  ;;  %v73_v15 = vmul.f32 %v65_v11, %v65_v11 }
  0x2b   :  { %p180_p5 = por %p179_p4, %p178_p3 }
  0x2c   :  { %v93_v16 = vadd.f32 %v71_v13, %v70_v12 }
  0x2d   :  { %p181_p6 = pnand %p180_p5, %p174_p2 }
  0x2e   :  { %v94_v17 = vadd.f32 %v93_v16, %v72_v14 }
  0x30   :  { %v95_v18 = vadd.f32 %v94_v17, %v73_v15 }
  0x32   :  { %96 = vadd.xlane.f32.xlu0 %v95_v18 }
  0xbf   :  { %v97_v19 = vpop.xlane.xlu0 %96 }
  0xc0   :  { %v98_v20 = vrot.slane %v97_v19, 4 }
  0xc2   :  { %v99_v21 = vadd.f32 %v98_v20, %v97_v19 }
  0xc4   :  { %v100_v22 = vrot.slane %v99_v21, 2 }
  0xc6   :  { %v101_v23 = vadd.f32 %v100_v22, %v99_v21 }
  0xc8   :  { %v102_v24 = vrot.slane %v101_v23, 1 }
  0xca   :  { %v103_v25 = vadd.f32 %v102_v24, %v101_v23 }
  0xcc   :  { %124 = vpush %v103_v25 }
  0xfd   :  { %s125_s5 = spop %124 }
  0xfe   :  { %v105_v26 = vstv %s125_s5 }
  0xff   :  { %107 = vst.msk [vmem:[#allocation8] sm:$0x1] %vm106_vm0, %v105_v26 }
 0x100   :  { %184 = shalt.err (!%p181_p6)
}
 0x101   :  { %s185_s10 = scalar_lea.hbm %s257_s2, 16 }
 0x102   :  { %p186_p7 = scmp.ne.s32.totalorder %s257_s2, %s185_s10  ;;  %p189_p8 = scmp.lt.u32.totalorder %s185_s10, %s257_s2 }
 0x104   :  { %p191_p9 = pnand %p189_p8, %p186_p7 }
 0x106   :  { %194 = shalt.err (!%p191_p9)
}
 0x107   :  { %117 = dma.vmem_to_hbm [thread:$0]  %s115_s4, 16, %s257_s2, [#allocation5]  }
 0x108   :  { %199 = dma.done.wait [#allocation5], 16  }
 0x109   :  { %200 = vsyncadd [#allocation5], 4294967280 }
 0x10a   :  { %121 = vsyncpa [#allocation4], 1 }
 0x10b   :  { %122 = vsyncpa [#allocation7], 1 }
 0x10c   :  { %123 = vsyncpa [#allocation5], 1 }

</bundles_post_ra>
